<compile_context>
chip_gen: v6e
topology: v6e:2x2x1
jax: 0.10.0
libtpu: 0.0.40
codegen_flags: <defaults>
</compile_context>

<pallas_src>
import math

import jax
import jax.numpy as jnp
from jax.experimental import pallas as pl
from jax.experimental.pallas import tpu as pltpu

_LOG_2PI = math.log(2.0 * math.pi)


def _actor_kernel(obs_ref, act_ref, w1_ref, b1_ref, w2_ref, b2_ref,
                  w3_ref, b3_ref, inv_std_ref, k_ref, out_ref):
    # ---- fused 3-layer MLP (MXU, bf16 operands, f32 accumulation) ----
    h = jnp.tanh(
        jnp.dot(obs_ref[...], w1_ref[...],
                preferred_element_type=jnp.float32) + b1_ref[...])
    h = jnp.tanh(
        jnp.dot(h.astype(w2_ref.dtype), w2_ref[...],
                preferred_element_type=jnp.float32) + b2_ref[...])
    ab = (jnp.dot(h.astype(w3_ref.dtype), w3_ref[...],
                  preferred_element_type=jnp.float32)
          + b3_ref[...])                                   # (TB, act_dim + 1)

    act_dim = inv_std_ref.shape[1] - 1

    # ---- Gaussian log-prob: -0.5 * sum(z^2) + K   (constants hoisted) ----
    z = (act_ref[...] - ab) * inv_std_ref[...]             # (TB, act_dim + 1)
    zz = z * z
    ssq_a = jnp.sum(zz[:, :act_dim], axis=-1, keepdims=True)   # (TB, 1)
    ssq_b = zz[:, act_dim:]                                     # (TB, 1)
    logp = -0.5 * jnp.concatenate([ssq_a, ssq_b], axis=-1) + k_ref[...]

    # single lane-packed output slab: [ mu_a | mu_b | logp_a | logp_b ]
    out_ref[...] = jnp.concatenate([ab, logp], axis=-1)


def safe_mlp_gaussian_actor(obs, params, a_h, b_h, *, block_b=None):
    """Returns (pi_a, pi_b, logp_a, logp_b); pi_* = (mu, std) arrays."""
    (w1, b1, w2, b2, w3, b3, log_stda, log_stdb) = params
    B, obs_dim = obs.shape
    act_dim = log_stda.shape[-1]
    h1, h2 = w1.shape[1], w2.shape[1]
    out_w = act_dim + 3

    # batch tile: multiple of 16 (bf16 sublane packing), capped at 512
    if block_b is None:
        block_b = min(512, -(-B // 16) * 16)
    block_b = max(16, (block_b // 16) * 16)
    B_pad = -(-B // block_b) * block_b
    grid = (B_pad // block_b,)

    # bf16 matmul operands (halves the dominant obs HBM stream)
    obs_c = obs.astype(jnp.bfloat16)
    w1_c, w2_c, w3_c = (w.astype(jnp.bfloat16) for w in (w1, w2, w3))
    act_cat = jnp.concatenate(
        [a_h.astype(jnp.float32), b_h.astype(jnp.float32)], axis=-1)

    if B_pad != B:  # pad tail tile; padded rows are sliced off after the call
        pad = ((0, B_pad - B), (0, 0))
        obs_c = jnp.pad(obs_c, pad)
        act_cat = jnp.pad(act_cat, pad)

    # hoisted log-prob constants
    log_std = jnp.concatenate([log_stda, log_stdb]).astype(jnp.float32)
    inv_std = jnp.exp(-log_std).reshape(1, act_dim + 1)
    k_vec = jnp.stack([
        -jnp.sum(log_stda) - 0.5 * act_dim * _LOG_2PI,
        -jnp.sum(log_stdb) - 0.5 * _LOG_2PI,
    ]).astype(jnp.float32).reshape(1, 2)

    def row_spec(width):
        return pl.BlockSpec((block_b, width), lambda i: (i, 0))

    def resident_spec(shape):
        return pl.BlockSpec(shape, lambda i: (0, 0))

    cost = pl.CostEstimate(
        flops=int(2 * B_pad * (obs_dim * h1 + h1 * h2 + h2 * (act_dim + 1))
                  + 8 * B_pad * (act_dim + 1)),
        transcendentals=int(B_pad * (h1 + h2)),
        bytes_accessed=int(obs_c.size * 2 + act_cat.size * 4
                           + (w1_c.size + w2_c.size + w3_c.size) * 2
                           + (b1.size + b2.size + b3.size
                              + 2 * (act_dim + 1) + 2) * 4
                           + B_pad * out_w * 4),
    )

    out = pl.pallas_call(
        _actor_kernel,
        out_shape=jax.ShapeDtypeStruct((B_pad, out_w), jnp.float32),
        grid=grid,
        in_specs=[
            row_spec(obs_dim),                 # obs           (streamed)
            row_spec(act_dim + 1),             # a_h || b_h    (streamed)
            resident_spec((obs_dim, h1)),      # w1            (resident)
            resident_spec((1, h1)),            # b1
            resident_spec((h1, h2)),           # w2
            resident_spec((1, h2)),            # b2
            resident_spec((h2, act_dim + 1)),  # w3
            resident_spec((1, act_dim + 1)),   # b3
            resident_spec((1, act_dim + 1)),   # inv_std
            resident_spec((1, 2)),             # [Ka, Kb]
        ],
        out_specs=pl.BlockSpec((block_b, out_w), lambda i: (i, 0)),
        compiler_params=pltpu.CompilerParams(
            dimension_semantics=("parallel",),
            vmem_limit_bytes=32 * 1024 * 1024),
        cost_estimate=cost,
    )(
        obs_c, act_cat,
        w1_c, b1.reshape(1, -1).astype(jnp.float32),
        w2_c, b2.reshape(1, -1).astype(jnp.float32),
        w3_c, b3.reshape(1, -1).astype(jnp.float32),
        inv_std, k_vec,
    )

    out = out[:B]
    mu_a = out[:, :act_dim]
    mu_b = out[:, act_dim:act_dim + 1]
    logp_a = out[:, act_dim + 1]
    logp_b = out[:, act_dim + 2]

    # std returned un-broadcast (rank-1 constants); consumers broadcast lazily.
    # TODO(synk): torch.distributions.Normal objects have no Pallas/JAX analog;
    # distributions are represented as (mu, std) array pairs.
    pi_a = (mu_a, jnp.exp(log_stda))
    pi_b = (mu_b, jnp.exp(log_stdb))
    return pi_a, pi_b, logp_a, logp_b


def init_params(key, obs_dim, hidden_sizes, act_dim):
    """Deterministic synthetic init matching the torch module's shapes."""
    sizes = [obs_dim] + list(hidden_sizes) + [act_dim + 1]
    params = []
    for j in range(len(sizes) - 1):
        key, kw, kb = jax.random.split(key, 3)
        scale = 1.0 / math.sqrt(sizes[j])
        w = jax.random.uniform(kw, (sizes[j], sizes[j + 1]),
                               minval=-scale, maxval=scale, dtype=jnp.float32)
        b = jax.random.uniform(kb, (sizes[j + 1],),
                               minval=-scale, maxval=scale, dtype=jnp.float32)
        params += [w, b]
    log_stda = -0.5 * jnp.ones((act_dim,), dtype=jnp.float32)
    log_stdb = -0.5 * jnp.ones((1,), dtype=jnp.float32)
    return tuple(params) + (log_stda, log_stdb)


def _reference(obs, params, a_h, b_h):
    """Pure-JAX reference (same bf16-operand / f32-accumulation matmuls)."""
    (w1, b1, w2, b2, w3, b3, log_stda, log_stdb) = params
    bf = jnp.bfloat16
    h = jnp.tanh(jnp.dot(obs.astype(bf), w1.astype(bf),
                         preferred_element_type=jnp.float32) + b1)
    h = jnp.tanh(jnp.dot(h.astype(bf), w2.astype(bf),
                         preferred_element_type=jnp.float32) + b2)
    ab = jnp.dot(h.astype(bf), w3.astype(bf),
                 preferred_element_type=jnp.float32) + b3
    mu_a, mu_b = ab[:, :-1], ab[:, -1:]

    def logp(x, mu, log_std):
        var = jnp.exp(2.0 * log_std)
        return (-((x - mu) ** 2) / (2.0 * var) - log_std
                - 0.5 * _LOG_2PI).sum(axis=-1)

    return mu_a, mu_b, logp(a_h, mu_a, log_stda), logp(b_h, mu_b, log_stdb)


if __name__ == "__main__":
    obs_dim, act_dim = 16, 4
    hidden_sizes = (32, 32)

    key = jax.random.PRNGKey(0)
    k_obs, k_a, k_b, k_p = jax.random.split(key, 4)
    params = init_params(k_p, obs_dim, hidden_sizes, act_dim)

    # --- small demo batch (single grid step, full-array tile) ---
    batch = 8
    obs = jax.random.normal(k_obs, (batch, obs_dim), dtype=jnp.float32)
    a_h = jax.random.normal(k_a, (batch, act_dim), dtype=jnp.float32)
    b_h = jax.random.normal(k_b, (batch, 1), dtype=jnp.float32)

    pi_a, pi_b, logp_a, logp_b = safe_mlp_gaussian_actor(obs, params, a_h, b_h)
    jax.block_until_ready((pi_a, pi_b, logp_a, logp_b))

    mu_a_r, mu_b_r, lpa_r, lpb_r = _reference(obs, params, a_h, b_h)
    assert jnp.allclose(pi_a[0], mu_a_r, atol=5e-3, rtol=1e-2)
    assert jnp.allclose(pi_b[0], mu_b_r, atol=5e-3, rtol=1e-2)
    assert jnp.allclose(logp_a, lpa_r, atol=1e-2, rtol=1e-2)
    assert jnp.allclose(logp_b, lpb_r, atol=1e-2, rtol=1e-2)

    # --- ragged batch exercising the gridded + padded tail path ---
    batch2 = 300
    k2o, k2a, k2b = jax.random.split(jax.random.PRNGKey(1), 3)
    obs2 = jax.random.normal(k2o, (batch2, obs_dim), dtype=jnp.float32)
    a2 = jax.random.normal(k2a, (batch2, act_dim), dtype=jnp.float32)
    b2 = jax.random.normal(k2b, (batch2, 1), dtype=jnp.float32)

    pi_a2, pi_b2, lpa2, lpb2 = safe_mlp_gaussian_actor(
        obs2, params, a2, b2, block_b=128)
    jax.block_until_ready((pi_a2, pi_b2, lpa2, lpb2))

    mu_a2r, mu_b2r, lpa2r, lpb2r = _reference(obs2, params, a2, b2)
    assert jnp.allclose(pi_a2[0], mu_a2r, atol=5e-3, rtol=1e-2)
    assert jnp.allclose(pi_b2[0], mu_b2r, atol=5e-3, rtol=1e-2)
    assert jnp.allclose(lpa2, lpa2r, atol=1e-2, rtol=1e-2)
    assert jnp.allclose(lpb2, lpb2r, atol=1e-2, rtol=1e-2)

    print("KERNEL_OK")
</pallas_src>

<mosaic_0001>
module attributes {stable_mosaic.version = 11 : i64} {
  func.func @_actor_kernel(%arg0: i32, %arg1: memref<16x16xbf16, #tpu.memory_space<vmem>>, %arg2: memref<16x5xf32, #tpu.memory_space<vmem>>, %arg3: memref<16x32xbf16, #tpu.memory_space<vmem>>, %arg4: memref<1x32xf32, #tpu.memory_space<vmem>>, %arg5: memref<32x32xbf16, #tpu.memory_space<vmem>>, %arg6: memref<1x32xf32, #tpu.memory_space<vmem>>, %arg7: memref<32x5xbf16, #tpu.memory_space<vmem>>, %arg8: memref<1x5xf32, #tpu.memory_space<vmem>>, %arg9: memref<1x5xf32, #tpu.memory_space<vmem>>, %arg10: memref<1x2xf32, #tpu.memory_space<vmem>>, %arg11: memref<16x7xf32, #tpu.memory_space<vmem>>) attributes {dimension_semantics = [#tpu.dimension_semantics<parallel>], iteration_bounds = array<i64: 1>, scalar_prefetch = 0 : i64, scratch_operands = 0 : i64, tpu.core_type = #tpu.core_type<tc>, window_params = [{transform_indices = @transform_0, window_bounds = array<i64: 16, 16>}, {transform_indices = @transform_1, window_bounds = array<i64: 16, 5>}, {pipeline_mode = #tpu.pipeline_mode<synchronous>, transform_indices = @transform_2, window_bounds = array<i64: 16, 32>}, {pipeline_mode = #tpu.pipeline_mode<synchronous>, transform_indices = @transform_3, window_bounds = array<i64: 1, 32>}, {pipeline_mode = #tpu.pipeline_mode<synchronous>, transform_indices = @transform_4, window_bounds = array<i64: 32, 32>}, {pipeline_mode = #tpu.pipeline_mode<synchronous>, transform_indices = @transform_5, window_bounds = array<i64: 1, 32>}, {pipeline_mode = #tpu.pipeline_mode<synchronous>, transform_indices = @transform_6, window_bounds = array<i64: 32, 5>}, {pipeline_mode = #tpu.pipeline_mode<synchronous>, transform_indices = @transform_7, window_bounds = array<i64: 1, 5>}, {pipeline_mode = #tpu.pipeline_mode<synchronous>, transform_indices = @transform_8, window_bounds = array<i64: 1, 5>}, {pipeline_mode = #tpu.pipeline_mode<synchronous>, transform_indices = @transform_9, window_bounds = array<i64: 1, 2>}, {transform_indices = @transform_10, window_bounds = array<i64: 16, 7>}]} {
    %c0 = arith.constant 0 : index
    %c0_0 = arith.constant 0 : index
    %0 = vector.load %arg1[%c0, %c0_0] : memref<16x16xbf16, #tpu.memory_space<vmem>>, vector<16x16xbf16>
    %c0_1 = arith.constant 0 : index
    %c0_2 = arith.constant 0 : index
    %1 = vector.load %arg3[%c0_1, %c0_2] : memref<16x32xbf16, #tpu.memory_space<vmem>>, vector<16x32xbf16>
    %cst = arith.constant dense<0.000000e+00> : vector<16x32xf32>
    %2 = tpu.matmul %0, %1, %cst {dimension_numbers = #tpu.dot_dimension_numbers<[1], [0], [0], [1], [0, 0, 1, 1], [], []>} : vector<16x16xbf16>, vector<16x32xbf16>, vector<16x32xf32> -> vector<16x32xf32>
    %c0_3 = arith.constant 0 : index
    %c0_4 = arith.constant 0 : index
    %3 = vector.load %arg4[%c0_3, %c0_4] : memref<1x32xf32, #tpu.memory_space<vmem>>, vector<1x32xf32>
    %4 = vector.broadcast %3 : vector<1x32xf32> to vector<16x32xf32>
    %5 = arith.addf %2, %4 : vector<16x32xf32>
    %6 = math.tanh %5 : vector<16x32xf32>
    %7 = arith.truncf %6 : vector<16x32xf32> to vector<16x32xbf16>
    %c0_5 = arith.constant 0 : index
    %c0_6 = arith.constant 0 : index
    %8 = vector.load %arg5[%c0_5, %c0_6] : memref<32x32xbf16, #tpu.memory_space<vmem>>, vector<32x32xbf16>
    %cst_7 = arith.constant dense<0.000000e+00> : vector<16x32xf32>
    %9 = tpu.matmul %7, %8, %cst_7 {dimension_numbers = #tpu.dot_dimension_numbers<[1], [0], [0], [1], [0, 0, 1, 1], [], []>} : vector<16x32xbf16>, vector<32x32xbf16>, vector<16x32xf32> -> vector<16x32xf32>
    %c0_8 = arith.constant 0 : index
    %c0_9 = arith.constant 0 : index
    %10 = vector.load %arg6[%c0_8, %c0_9] : memref<1x32xf32, #tpu.memory_space<vmem>>, vector<1x32xf32>
    %11 = vector.broadcast %10 : vector<1x32xf32> to vector<16x32xf32>
    %12 = arith.addf %9, %11 : vector<16x32xf32>
    %13 = math.tanh %12 : vector<16x32xf32>
    %14 = arith.truncf %13 : vector<16x32xf32> to vector<16x32xbf16>
    %c0_10 = arith.constant 0 : index
    %c0_11 = arith.constant 0 : index
    %15 = vector.load %arg7[%c0_10, %c0_11] : memref<32x5xbf16, #tpu.memory_space<vmem>>, vector<32x5xbf16>
    %cst_12 = arith.constant dense<0.000000e+00> : vector<16x5xf32>
    %16 = tpu.matmul %14, %15, %cst_12 {dimension_numbers = #tpu.dot_dimension_numbers<[1], [0], [0], [1], [0, 0, 1, 1], [], []>} : vector<16x32xbf16>, vector<32x5xbf16>, vector<16x5xf32> -> vector<16x5xf32>
    %c0_13 = arith.constant 0 : index
    %c0_14 = arith.constant 0 : index
    %17 = vector.load %arg8[%c0_13, %c0_14] : memref<1x5xf32, #tpu.memory_space<vmem>>, vector<1x5xf32>
    %18 = vector.broadcast %17 : vector<1x5xf32> to vector<16x5xf32>
    %19 = arith.addf %16, %18 : vector<16x5xf32>
    %c0_15 = arith.constant 0 : index
    %c0_16 = arith.constant 0 : index
    %20 = vector.load %arg2[%c0_15, %c0_16] : memref<16x5xf32, #tpu.memory_space<vmem>>, vector<16x5xf32>
    %21 = arith.subf %20, %19 : vector<16x5xf32>
    %c0_17 = arith.constant 0 : index
    %c0_18 = arith.constant 0 : index
    %22 = vector.load %arg9[%c0_17, %c0_18] : memref<1x5xf32, #tpu.memory_space<vmem>>, vector<1x5xf32>
    %23 = vector.broadcast %22 : vector<1x5xf32> to vector<16x5xf32>
    %24 = arith.mulf %21, %23 : vector<16x5xf32>
    %25 = arith.mulf %24, %24 : vector<16x5xf32>
    %26 = vector.extract_strided_slice %25 {offsets = [0, 0], sizes = [16, 4], strides = [1, 1]} : vector<16x5xf32> to vector<16x4xf32>
    %cst_19 = arith.constant dense<0.000000e+00> : vector<16xf32>
    %27 = vector.multi_reduction <add>, %26, %cst_19 [1] : vector<16x4xf32> to vector<16xf32>
    %28 = vector.shape_cast %27 : vector<16xf32> to vector<16x1xf32>
    %29 = vector.extract_strided_slice %25 {offsets = [0, 4], sizes = [16, 1], strides = [1, 1]} : vector<16x5xf32> to vector<16x1xf32>
    %30 = tpu.concatenate %28, %29 in 1 : vector<16x1xf32>, vector<16x1xf32> -> vector<16x2xf32>
    %cst_20 = arith.constant -5.000000e-01 : f32
    %31 = vector.broadcast %cst_20 : f32 to vector<16x2xf32>
    %32 = arith.mulf %31, %30 : vector<16x2xf32>
    %c0_21 = arith.constant 0 : index
    %c0_22 = arith.constant 0 : index
    %33 = vector.load %arg10[%c0_21, %c0_22] : memref<1x2xf32, #tpu.memory_space<vmem>>, vector<1x2xf32>
    %34 = vector.broadcast %33 : vector<1x2xf32> to vector<16x2xf32>
    %35 = arith.addf %32, %34 : vector<16x2xf32>
    %36 = tpu.concatenate %19, %35 in 1 : vector<16x5xf32>, vector<16x2xf32> -> vector<16x7xf32>
    %c0_23 = arith.constant 0 : index
    %c0_24 = arith.constant 0 : index
    %37 = vector.load %arg11[%c0_23, %c0_24] : memref<16x7xf32, #tpu.memory_space<vmem>>, vector<16x7xf32>
    tpu.vector_store %arg11[%c0_23, %c0_24], %36 {strides = array<i32>} : memref<16x7xf32, #tpu.memory_space<vmem>>, vector<16x7xf32>,
    return
  }
  func.func @transform_0(%arg0: i32) -> (i32, i32) {
    %c0_i32 = arith.constant 0 : i32
    %c0_i32_0 = arith.constant 0 : i32
    return %arg0, %c0_i32 : i32, i32
  }
  func.func @transform_1(%arg0: i32) -> (i32, i32) {
    %c0_i32 = arith.constant 0 : i32
    %c0_i32_0 = arith.constant 0 : i32
    return %arg0, %c0_i32 : i32, i32
  }
  func.func @transform_2(%arg0: i32) -> (i32, i32) {
    %c0_i32 = arith.constant 0 : i32
    %c0_i32_0 = arith.constant 0 : i32
    %c0_i32_1 = arith.constant 0 : i32
    return %c0_i32, %c0_i32_0 : i32, i32
  }
  func.func @transform_3(%arg0: i32) -> (i32, i32) {
    %c0_i32 = arith.constant 0 : i32
    %c0_i32_0 = arith.constant 0 : i32
    %c0_i32_1 = arith.constant 0 : i32
    return %c0_i32, %c0_i32_0 : i32, i32
  }
  func.func @transform_4(%arg0: i32) -> (i32, i32) {
    %c0_i32 = arith.constant 0 : i32
    %c0_i32_0 = arith.constant 0 : i32
    %c0_i32_1 = arith.constant 0 : i32
    return %c0_i32, %c0_i32_0 : i32, i32
  }
  func.func @transform_5(%arg0: i32) -> (i32, i32) {
    %c0_i32 = arith.constant 0 : i32
    %c0_i32_0 = arith.constant 0 : i32
    %c0_i32_1 = arith.constant 0 : i32
    return %c0_i32, %c0_i32_0 : i32, i32
  }
  func.func @transform_6(%arg0: i32) -> (i32, i32) {
    %c0_i32 = arith.constant 0 : i32
    %c0_i32_0 = arith.constant 0 : i32
    %c0_i32_1 = arith.constant 0 : i32
    return %c0_i32, %c0_i32_0 : i32, i32
  }
  func.func @transform_7(%arg0: i32) -> (i32, i32) {
    %c0_i32 = arith.constant 0 : i32
    %c0_i32_0 = arith.constant 0 : i32
    %c0_i32_1 = arith.constant 0 : i32
    return %c0_i32, %c0_i32_0 : i32, i32
  }
  func.func @transform_8(%arg0: i32) -> (i32, i32) {
    %c0_i32 = arith.constant 0 : i32
    %c0_i32_0 = arith.constant 0 : i32
    %c0_i32_1 = arith.constant 0 : i32
    return %c0_i32, %c0_i32_0 : i32, i32
  }
  func.func @transform_9(%arg0: i32) -> (i32, i32) {
    %c0_i32 = arith.constant 0 : i32
    %c0_i32_0 = arith.constant 0 : i32
    %c0_i32_1 = arith.constant 0 : i32
    return %c0_i32, %c0_i32_0 : i32, i32
  }
  func.func @transform_10(%arg0: i32) -> (i32, i32) {
    %c0_i32 = arith.constant 0 : i32
    %c0_i32_0 = arith.constant 0 : i32
    return %arg0, %c0_i32 : i32, i32
  }
}

</mosaic_0001>

<bundles_post_ra>
// kernel: tpu_custom_call.1
= control target key start
LH: loop header
LB: loop body
LE: loop exit
PB: predicated region body
PF: predicated region fallthrough
CT: control target
= control target key end

     0   :  { %v368_v0 = vmov 0.0   ;;  %vm369_vm0 = vmmov 0   ;;  %vm58_vm1 = vcmask 130048   ;;  %vm129_vm2 = vcmask 261120   ;;  %s371_s11 = smov 5   ;;  %s474_s2 = inlined_call_operand.vmem [shape: bf16[16,32], index: 2, kind: input, shape index: {}]   ;;  %s475_s0 = inlined_call_operand.vmem [shape: bf16[16,16], index: 0, kind: input, shape index: {}]   ;;  %s476_s4 = inlined_call_operand.vmem [shape: bf16[32,32], index: 4, kind: input, shape index: {}]   ;;  %s477_s3 = inlined_call_operand.vmem [shape: f32[1,32], index: 3, kind: input, shape index: {}]   ;;  %s478_s6 = inlined_call_operand.vmem [shape: bf16[32,5], index: 6, kind: input, shape index: {}]   ;;  %s479_s5 = inlined_call_operand.vmem [shape: f32[1,32], index: 5, kind: input, shape index: {}]   ;;  %s480_s7 = inlined_call_operand.vmem [shape: f32[1,5], index: 7, kind: input, shape index: {}]   ;;  %s481_s1 = inlined_call_operand.vmem [shape: f32[16,5], index: 1, kind: input, shape index: {}]   ;;  %s482_s8 = inlined_call_operand.vmem [shape: f32[1,5], index: 8, kind: input, shape index: {}]   ;;  %s483_s9 = inlined_call_operand.vmem [shape: f32[1,2], index: 9, kind: input, shape index: {}]   ;;  %s484_s10 = inlined_call_operand.vmem [shape: f32[16,7], index: 10, kind: output, shape index: {}]  }
   0x1   :  { %328 = vmatprep.subr.bf16.mxu0 %v368_v0  ;;  %v354_v1 = vld [vmem:[%s474_s2] sm:$0xff]   ;;  %330 = vmatprep.mubr.msk.bf16.mxu0 %vm369_vm0, %v368_v0  ;;  %v356_v3 = vld [vmem:[%s476_s4 + $0x8] sm:$0xff]   ;;  %vm259_vm3 = vcmask 31744   ;;  %vm274_vm4 = vcmask 7168   ;;  %vm296_vm5 = vcmask 39936   ;;  %vm299_vm6 = vcmask 56320  }
   0x2   :  { %v355_v2 = vld [vmem:[%s475_s0] sm:$0xff]   ;;  %334 = vmatprep.subr.bf16.mxu1 %v368_v0  ;;  %338 = vmatprep.mubr.msk.bf16.mxu1 %vm369_vm0, %v368_v0  ;;  %v358_v15 = vld [vmem:[%s478_s6 + $0x8] sm:$0xff]  }
   0x3   :  { %329 = vmatpush3.bf16.msra.mxu0 %v354_v1  ;;  %335 = vmatpush3.bf16.msra.mxu1 %v356_v3  ;;  %v357_v4 = vld [vmem:[%s476_s4] sm:$0xff]   ;;  %v245_v35 = vld [vmem:[%s481_s1 + $0x8] sm:$0xff] }
   0x4   :  { %342 = vmatprep.subr.bf16.mxu0 %v368_v0  ;;  %336 = vmatprep.subr.bf16.mxu1 %v368_v0  ;;  %v306_v5 = vld [vmem:[%s477_s3] ss:$0 sm:$0xff] }
   0x5   :  { %v359_v16 = vld [vmem:[%s478_s6] sm:$0xff]  }
   0x6   :  { %331 = vmatmul.mubr.msk.bf16.vlgmr.msra.gmra.mxu0 %vm58_vm1, %v355_v2  ;;  %v310_v17 = vld [vmem:[%s479_s5] ss:$0 sm:$0xff] }
   0x7   :  { %346 = vmatprep.mubr.msk.bf16.mxu0 %vm369_vm0, %v368_v0  ;;  %337 = vmatpush3.bf16.msra.mxu1 %v357_v4  ;;  %v314_v27 = vld [vmem:[%s480_s7] ss:$0 sm:$0xff]  ;;  %s370_s7 = smov 125  }
   0x8   :  { %343 = vmatpush3.bf16.msra.mxu0 %v358_v15  ;;  %v244_v29 = vld [vmem:[%s481_s1] sm:$0xff] }
   0x9   :  { %344 = vmatprep.subr.bf16.mxu0 %v368_v0  ;;  %v318_v32 = vld [vmem:[%s482_s8] ss:$0 sm:$0xff] }
   0xa   :  { %v319_v48 = vld [vmem:[%s483_s9] ss:$0 sm:$0xff] }
   0xc   :  { %345 = vmatpush3.bf16.msra.mxu0 %v359_v16 }
  0xc6   :  { %v96_v6 = vpop.f32.mrf.mxu0 }
  0xc7   :  { %v97_v7 = vadd.f32 %v306_v5, %v96_v6 }
  0xc8   :  { %v332_v8 = vpop.f32.mrf.mxu0 }
  0xc9   :  { %360 = vtanh.f32 %v97_v7 }
  0xca   :  { %v99_v9 = vpop.f32.mrf.mxu0 }
  0xcb   :  { %v100_v10 = vadd.f32 %v306_v5, %v99_v9 }
  0xcc   :  { %v333_v11 = vpop.f32.mrf.mxu0 }
  0xcd   :  { %362 = vtanh.f32 %v100_v10 }
  0xd6   :  { %v361_v12 = vpop.eup %360 }
  0xda   :  { %v363_v13 = vpop.eup %362 }
  0xdb   :  { %v105_v14 = vpack.c.bf16 %v363_v13, %v361_v12 }
  0xdd   :  { %339 = vmatmul.mubr.msk.bf16.vlgmr.msra.gmra.mxu1 %vm129_vm2, %v105_v14 }
 0x19d   :  { %v167_v18 = vpop.f32.mrf.mxu1 }
 0x19e   :  { %v168_v19 = vadd.f32 %v310_v17, %v167_v18 }
 0x19f   :  { %v340_v20 = vpop.f32.mrf.mxu1 }
 0x1a0   :  { %364 = vtanh.f32 %v168_v19 }
 0x1a1   :  { %v170_v21 = vpop.f32.mrf.mxu1 }
 0x1a2   :  { %v171_v22 = vadd.f32 %v310_v17, %v170_v21 }
 0x1a3   :  { %v341_v23 = vpop.f32.mrf.mxu1 }
 0x1a4   :  { %366 = vtanh.f32 %v171_v22 }
 0x1ad   :  { %v365_v24 = vpop.eup %364 }
 0x1b1   :  { %v367_v25 = vpop.eup %366 }
 0x1b2   :  { %v176_v26 = vpack.c.bf16 %v367_v25, %v365_v24 }
 0x1b4   :  { %347 = vmatmul.mubr.msk.bf16.vlgmr.msra.gmra.mxu0 %vm129_vm2, %v176_v26 }
 0x274   :  { %v237_v28 = vpop.f32.mrf.mxu0 }
 0x275   :  { %v238_v30 = vadd.f32 %v314_v27, %v237_v28 }
 0x276   :  { %v348_v31 = vpop.f32.mrf.mxu0 }
 0x277   :  { %v246_v33 = vsub.f32 %v244_v29, %v238_v30 }
 0x278   :  { %v240_v34 = vpop.f32.mrf.mxu0 }
 0x279   :  { %v241_v36 = vadd.f32 %v314_v27, %v240_v34  ;;  %v255_v37 = vmul.f32 %v318_v32, %v246_v33 }
 0x27a   :  { %v349_v38 = vpop.f32.mrf.mxu0 }
 0x27b   :  { %v247_v39 = vsub.f32 %v245_v35, %v241_v36  ;;  %v257_v40 = vmul.f32 %v255_v37, %v255_v37 }
 0x27d   :  { %268 = vrot.lane.b32.xlu1 %v257_v40, %s370_s7  ;;  %v256_v41 = vmul.f32 %v318_v32, %v247_v39  ;;  %v260_v42 = vsel %vm259_vm3, %v257_v40, 0.0 }
 0x27e   :  { %261 = vadd.xlane.f32.xlu0 %v260_v42 }
 0x27f   :  { %v258_v43 = vmul.f32 %v256_v41, %v256_v41 }
 0x281   :  { %270 = vrot.lane.b32.xlu1 %v258_v43, %s370_s7  ;;  %v263_v44 = vsel %vm259_vm3, %v258_v43, 0.0 }
 0x282   :  { %264 = vadd.xlane.f32.xlu0 %v263_v44 }
 0x2ef   :  { %v269_v45 = vpop.permute.xlu1 %268 }
 0x2f3   :  { %v271_v50 = vpop.permute.xlu1 %270 }
 0x307   :  { %v262_v46 = vpop.xlane.xlu0 %261 }
 0x308   :  { %v275_v47 = vsel %vm274_vm4, %v262_v46, %v269_v45 }
 0x309   :  { %v277_v49 = vmul.f32 -0.5, %v275_v47 }
 0x30b   :  { %v265_v51 = vpop.xlane.xlu0 %264  ;;  %v286_v52 = vadd.f32 %v319_v48, %v277_v49 }
 0x30c   :  { %v276_v53 = vsel %vm274_vm4, %v265_v51, %v271_v50 }
 0x30d   :  { %v278_v54 = vmul.f32 -0.5, %v276_v53  ;;  %290 = vrot.lane.b32.xlu0 %v286_v52, %s371_s11 }
 0x30f   :  { %v287_v55 = vadd.f32 %v319_v48, %v278_v54 }
 0x311   :  { %292 = vrot.lane.b32.xlu1 %v287_v55, %s371_s11 }
 0x37f   :  { %v291_v56 = vpop.permute.xlu0 %290 }
 0x380   :  { %v297_v57 = vsel %vm296_vm5, %v238_v30, %v291_v56 }
 0x381   :  { %300 = vst.msk [vmem:[%s484_s10] sm:$0xff] %vm299_vm6, %v297_v57 }
 0x383   :  { %v293_v58 = vpop.permute.xlu1 %292 }
 0x384   :  { %v298_v59 = vsel %vm296_vm5, %v241_v36, %v293_v58 }
 0x385   :  { %301 = vst.msk [vmem:[%s484_s10 + $0x8] sm:$0xff] %vm299_vm6, %v298_v59 }

</bundles_post_ra>
